<compile_context>
chip_gen: v5e
topology: v5e:2x2
jax: 0.10.0
libtpu: 0.0.40
codegen_flags: <defaults>
</compile_context>

<pallas_src>
import functools

import jax
import jax.numpy as jnp
import numpy as np
from jax.experimental import pallas as pl
from jax.experimental.pallas import tpu as pltpu

_LANES = 128
_MAX_CHUNK = 128 * _LANES          # 16384 f32 elements (64 KiB) per N-chunk


def _gp_kernel(g_ref, o_ref, ss_ref, *, batch):
    """Accumulate per-sample sum-of-squares; finalize to the scalar loss."""
    step = pl.program_id(0)

    @pl.when(step == 0)
    def _init():
        ss_ref[...] = jnp.zeros_like(ss_ref)

    g = g_ref[...].astype(jnp.float32)                      # (B, TN), lane-dense
    ss_ref[...] += jnp.sum(g * g, axis=1, keepdims=True)    # (B, 1)

    @pl.when(step == pl.num_programs(0) - 1)
    def _finalize():
        norm = jnp.sqrt(ss_ref[...])                        # (B, 1) per-sample L2
        pen = (norm - 1.0) ** 2                             # (B, 1)
        o_ref[...] = jnp.sum(pen, axis=0, keepdims=True) * (1.0 / batch)


def gradient_penalty_from_grad(grad_interp):
    """loss = mean_b ( ||grad_interp[b].ravel()||_2 - 1 )^2  (Pallas kernel)."""
    B = grad_interp.shape[0]
    g = grad_interp.reshape(B, -1).astype(jnp.float32)
    N = g.shape[1]

    # Lane-dense padding of the reduction axis; zero pad is exact for sum(g*g).
    n_lane = ((N + _LANES - 1) // _LANES) * _LANES
    tn = min(n_lane, _MAX_CHUNK)
    n_pad = ((n_lane + tn - 1) // tn) * tn
    if n_pad != N:
        g = jnp.pad(g, ((0, 0), (0, n_pad - N)))
    num_chunks = n_pad // tn

    out = pl.pallas_call(
        functools.partial(_gp_kernel, batch=B),
        out_shape=jax.ShapeDtypeStruct((1, 1), jnp.float32),
        grid_spec=pltpu.PrefetchScalarGridSpec(
            num_scalar_prefetch=0,
            grid=(num_chunks,),
            in_specs=[pl.BlockSpec((B, tn), lambda i: (0, i))],
            out_specs=pl.BlockSpec((1, 1), lambda i: (0, 0)),
            scratch_shapes=[pltpu.VMEM((B, 1), jnp.float32)],
        ),
        compiler_params=pltpu.CompilerParams(
            dimension_semantics=("arbitrary",)),
    )(g)
    return out[0, 0]


def gradient_penalty_loss(critic_fn, interp):
    """Full GradientPenaltyLoss.forward(interp, interp_crit) semantics.

    interp_crit = critic_fn(interp); grad_outputs = ones_like(interp_crit).
    """
    # TODO(synk): torch.autograd.grad (backprop through the critic graph) has
    # no Pallas equivalent; it is performed with jax.vjp here and only the
    # penalty arithmetic runs inside the Pallas kernel above.
    interp_crit, vjp_fn = jax.vjp(critic_fn, interp)
    grad_outputs = jnp.ones_like(interp_crit)       # torch's ones-filled buffer
    (grad_interp,) = vjp_fn(grad_outputs)
    return gradient_penalty_from_grad(grad_interp)


# ----------------------------------------------------------------------------
# Pure-JAX reference for verification
# ----------------------------------------------------------------------------
def gradient_penalty_reference(grad_interp):
    B = grad_interp.shape[0]
    g = grad_interp.reshape(B, -1).astype(jnp.float32)
    norm = jnp.sqrt(jnp.sum(g * g, axis=1))
    return jnp.mean((norm - 1.0) ** 2)


if __name__ == "__main__":
    B, C, H, W = 2, 4, 16, 16

    key = jax.random.PRNGKey(0)
    k_x, k_w, k_b = jax.random.split(key, 3)
    interp = jax.random.normal(k_x, (B, C, H, W), jnp.float32)
    w = 0.5 * jax.random.normal(k_w, (C, H, W), jnp.float32)
    b = 0.1 * jax.random.normal(k_b, (C, H, W), jnp.float32)

    def critic(x):
        # Simple differentiable stand-in critic: per-sample scalar score.
        return jnp.mean(jnp.tanh(x * w + b), axis=(1, 2, 3))[:, None]

    loss_fn = jax.jit(functools.partial(gradient_penalty_loss, critic))
    loss = loss_fn(interp)
    jax.block_until_ready(loss)

    # Reference: identical vjp, pure-JAX penalty arithmetic.
    crit, vjp_fn = jax.vjp(critic, interp)
    (grad_ref,) = vjp_fn(jnp.ones_like(crit))
    ref = gradient_penalty_reference(grad_ref)

    np.testing.assert_allclose(np.asarray(loss), np.asarray(ref),
                               rtol=1e-5, atol=1e-6)
    print("KERNEL_OK")
</pallas_src>

<mosaic_0001>
module attributes {stable_mosaic.version = 11 : i64} {
  func.func @_gp_kernel(%arg0: i32, %arg1: memref<2x1024xf32, #tpu.memory_space<vmem>>, %arg2: memref<1x1xf32, #tpu.memory_space<vmem>>, %arg3: memref<2x1xf32, #tpu.memory_space<vmem>>) attributes {dimension_semantics = [#tpu.dimension_semantics<arbitrary>], iteration_bounds = array<i64: 1>, scalar_prefetch = 0 : i64, scratch_operands = 1 : i64, tpu.core_type = #tpu.core_type<tc>, window_params = [{transform_indices = @transform_0, window_bounds = array<i64: 2, 1024>}, {pipeline_mode = #tpu.pipeline_mode<synchronous>, transform_indices = @transform_1, window_bounds = array<i64: 1, 1>}]} {
    %c0_i32 = arith.constant 0 : i32
    %0 = arith.cmpi eq, %arg0, %c0_i32 : i32
    %1 = arith.extui %0 : i1 to i32
    %c0_i32_0 = arith.constant 0 : i32
    %2 = arith.cmpi ne, %1, %c0_i32_0 : i32
    scf.if %2 {
      %cst_8 = arith.constant 0.000000e+00 : f32
      %13 = vector.broadcast %cst_8 : f32 to vector<2x1xf32>
      %c0_9 = arith.constant 0 : index
      %c0_10 = arith.constant 0 : index
      %14 = vector.load %arg3[%c0_9, %c0_10] : memref<2x1xf32, #tpu.memory_space<vmem>>, vector<2x1xf32>
      tpu.vector_store %arg3[%c0_9, %c0_10], %13 {strides = array<i32>} : memref<2x1xf32, #tpu.memory_space<vmem>>, vector<2x1xf32>,
    } else {
    }
    %c0 = arith.constant 0 : index
    %c0_1 = arith.constant 0 : index
    %3 = vector.load %arg1[%c0, %c0_1] : memref<2x1024xf32, #tpu.memory_space<vmem>>, vector<2x1024xf32>
    %c0_2 = arith.constant 0 : index
    %c0_3 = arith.constant 0 : index
    %4 = vector.load %arg3[%c0_2, %c0_3] : memref<2x1xf32, #tpu.memory_space<vmem>>, vector<2x1xf32>
    %5 = arith.mulf %3, %3 : vector<2x1024xf32>
    %cst = arith.constant dense<0.000000e+00> : vector<2xf32>
    %6 = vector.multi_reduction <add>, %5, %cst [1] : vector<2x1024xf32> to vector<2xf32>
    %7 = vector.shape_cast %6 : vector<2xf32> to vector<2x1xf32>
    %8 = arith.addf %4, %7 : vector<2x1xf32>
    %c0_4 = arith.constant 0 : index
    %c0_5 = arith.constant 0 : index
    %9 = vector.load %arg3[%c0_4, %c0_5] : memref<2x1xf32, #tpu.memory_space<vmem>>, vector<2x1xf32>
    tpu.vector_store %arg3[%c0_4, %c0_5], %8 {strides = array<i32>} : memref<2x1xf32, #tpu.memory_space<vmem>>, vector<2x1xf32>,
    %c0_i32_6 = arith.constant 0 : i32
    %10 = arith.cmpi eq, %arg0, %c0_i32_6 : i32
    %11 = arith.extui %10 : i1 to i32
    %c0_i32_7 = arith.constant 0 : i32
    %12 = arith.cmpi ne, %11, %c0_i32_7 : i32
    scf.if %12 {
      %c0_8 = arith.constant 0 : index
      %c0_9 = arith.constant 0 : index
      %13 = vector.load %arg3[%c0_8, %c0_9] : memref<2x1xf32, #tpu.memory_space<vmem>>, vector<2x1xf32>
      %14 = math.sqrt %13 : vector<2x1xf32>
      %cst_10 = arith.constant 1.000000e+00 : f32
      %15 = vector.broadcast %cst_10 : f32 to vector<2x1xf32>
      %16 = arith.subf %14, %15 : vector<2x1xf32>
      %17 = arith.mulf %16, %16 : vector<2x1xf32>
      %cst_11 = arith.constant dense<0.000000e+00> : vector<1xf32>
      %18 = vector.multi_reduction <add>, %17, %cst_11 [0] : vector<2x1xf32> to vector<1xf32>
      %19 = vector.shape_cast %18 : vector<1xf32> to vector<1x1xf32>
      %cst_12 = arith.constant 5.000000e-01 : f32
      %20 = vector.broadcast %cst_12 : f32 to vector<1x1xf32>
      %21 = arith.mulf %19, %20 : vector<1x1xf32>
      %c0_13 = arith.constant 0 : index
      %c0_14 = arith.constant 0 : index
      %22 = vector.load %arg2[%c0_13, %c0_14] : memref<1x1xf32, #tpu.memory_space<vmem>>, vector<1x1xf32>
      tpu.vector_store %arg2[%c0_13, %c0_14], %21 {strides = array<i32>} : memref<1x1xf32, #tpu.memory_space<vmem>>, vector<1x1xf32>,
    } else {
    }
    return
  }
  func.func @transform_0(%arg0: i32) -> (i32, i32) {
    %c0_i32 = arith.constant 0 : i32
    %c0_i32_0 = arith.constant 0 : i32
    return %c0_i32, %arg0 : i32, i32
  }
  func.func @transform_1(%arg0: i32) -> (i32, i32) {
    %c0_i32 = arith.constant 0 : i32
    %c0_i32_0 = arith.constant 0 : i32
    %c0_i32_1 = arith.constant 0 : i32
    return %c0_i32, %c0_i32_0 : i32, i32
  }
}

</mosaic_0001>

<bundles_post_ra>
// kernel: gradient_penalty_loss.1
= control target key start
LH: loop header
LB: loop body
LE: loop exit
PB: predicated region body
PF: predicated region fallthrough
CT: control target
= control target key end

     0   :  { %vm13_vm0 = vcmask 1024   ;;  %v137_v4 = vmov 0.0   ;;  %s169_s0 = inlined_call_operand.vmem [shape: f32[2,1024], index: 0, kind: input, shape index: {}]   ;;  %s170_s1 = inlined_call_operand.hbm [shape: f32[1,1], index: 1, kind: output, shape index: {}]  }
   0x1   :  { %v15_v0 = vld [vmem:[%s169_s0] sm:$0xff]  ;;  %v16_v1 = vld [vmem:[%s169_s0 + $0x8] sm:$0xff]  ;;  %14 = vst.msk [vmem:[#allocation2] sm:$0x3] %vm13_vm0, %v137_v4 }
   0x2   :  { %v18_v2 = vmul.f32 %v15_v0, %v15_v0  ;;  %v19_v3 = vmul.f32 %v16_v1, %v16_v1 }
   0x3   :  { %6 = vsyncpa [#allocation4], 0  ;;  %vm41_vm1 = vcmask 1041408   ;;  %s138_s0 = smov [#allocation3]   ;;  %s97_s13 = sshll.u32 %s170_s1, 4  ;;  %vm88_vm4 = vcmask 0   ;;  %s98_s13 = int_to_ptr.hbm [resolvable:$true] %s97_s13 }
   0x4   :  { %22 = vst [vmem:[#allocation1] ss:$4 sm:$0xff] %v18_v2  ;;  %s95_s10 = sshll.u32 %s138_s0, 4  ;;  %s96_s10 = int_to_ptr.vmem [resolvable:$true] %s95_s10 }
   0x5   :  { %24 = vst [vmem:[#allocation1 + $0x20] ss:$4 sm:$0xff] %v19_v3 }
   0x8   :  { %v17_v28 = vld [vmem:[#allocation2] sm:$0x3] }
   0xb   :  { %v25_v5 = vld.sshfl [vmem:[#allocation1] sm:$0xff pattern:$0x73625140]  ;;  %v26_v6 = vld.sshfl [vmem:[#allocation1 + $0x8] sm:$0xff pattern:$0x73625140] }
   0xc   :  { %v27_v7 = vld.sshfl [vmem:[#allocation1 + $0x10] sm:$0xff pattern:$0x73625140]  ;;  %v28_v8 = vld.sshfl [vmem:[#allocation1 + $0x18] sm:$0xff pattern:$0x73625140] }
   0xd   :  { %v42_v9 = vsel %vm41_vm1, %v25_v5, 0.0  ;;  %v43_v10 = vsel %vm41_vm1, %v26_v6, 0.0  ;;  %v45_v11 = vsel %vm41_vm1, %v27_v7, 0.0  ;;  %v29_v12 = vld.sshfl [vmem:[#allocation1 + $0x20] sm:$0xff pattern:$0x73625140] }
   0xe   :  { %v44_v13 = vadd.f32 %v43_v10, %v42_v9  ;;  %v47_v14 = vsel %vm41_vm1, %v28_v8, 0.0  ;;  %v30_v15 = vld.sshfl [vmem:[#allocation1 + $0x28] sm:$0xff pattern:$0x73625140]  ;;  %v49_v17 = vsel %vm41_vm1, %v29_v12, 0.0 }
   0xf   :  { %v31_v18 = vld.sshfl [vmem:[#allocation1 + $0x30] sm:$0xff pattern:$0x73625140]  ;;  %v51_v20 = vsel %vm41_vm1, %v30_v15, 0.0 }
  0x10   :  { %v46_v16 = vadd.f32 %v45_v11, %v44_v13  ;;  %v32_v21 = vld.sshfl [vmem:[#allocation1 + $0x38] sm:$0xff pattern:$0x73625140]  ;;  %v53_v23 = vsel %vm41_vm1, %v31_v18, 0.0 }
  0x11   :  { %v55_v25 = vsel %vm41_vm1, %v32_v21, 0.0 }
  0x12   :  { %v48_v19 = vadd.f32 %v47_v14, %v46_v16 }
  0x14   :  { %v50_v22 = vadd.f32 %v49_v17, %v48_v19 }
  0x16   :  { %v52_v24 = vadd.f32 %v51_v20, %v50_v22 }
  0x18   :  { %v54_v26 = vadd.f32 %v53_v23, %v52_v24 }
  0x1a   :  { %v56_v27 = vadd.f32 %v55_v25, %v54_v26 }
  0x1c   :  { %57 = vadd.xlane.f32.xlu0 %v56_v27 }
  0x8f   :  { %v58_v29 = vpop.xlane.xlu0 %57 }
  0x90   :  { %v59_v30 = vadd.f32 %v58_v29, %v17_v28 }
  0x92   :  { %61 = vst.msk [vmem:[#allocation2] sm:$0x3] %vm13_vm0, %v59_v30 }
  0x99   :  { %v65_v31 = vld [vmem:[#allocation2] sm:$0x3] }
  0x9a   :  { %109 = vrsqrt.f32 %v65_v31  ;;  %vm73_vm2 = vcmp.eq.f32.partialorder %v65_v31, inf  ;;  %v76_v39 = vand.u32 2147483648, %v65_v31  ;;  %vm75_vm3 = vcmp.eq.f32.partialorder %v65_v31, 0.0 }
  0xa0   :  { %v110_v32 = vpop.eup %109 }
  0xa1   :  { %v67_v33 = vmul.f32 %v110_v32, %v65_v31 }
  0xa3   :  { %v68_v34 = vmul.f32 %v110_v32, %v67_v33 }
  0xa5   :  { %v69_v35 = vmul.f32 0.5, %v68_v34 }
  0xa7   :  { %v70_v36 = vsub.f32 1.5, %v69_v35 }
  0xa9   :  { %v71_v37 = vmul.f32 %v110_v32, %v70_v36 }
  0xab   :  { %v72_v38 = vmul.f32 %v71_v37, %v65_v31 }
  0xad   :  { %v74_v40 = vsel %vm73_vm2, %v65_v31, %v72_v38 }
  0xae   :  { %v77_v41 = vsel %vm75_vm3, %v76_v39, %v74_v40 }
  0xaf   :  { %v106_v42 = vadd.f32 -1.0, %v77_v41 }
  0xb1   :  { %v79_v43 = vmul.f32 %v106_v42, %v106_v42 }
  0xb3   :  { %v80_v44 = vsel %vm13_vm0, %v79_v43, 0.0 }
  0xb4   :  { %v81_v45 = vrot.slane %v80_v44, 4 }
  0xb6   :  { %v82_v46 = vadd.f32 %v81_v45, %v80_v44 }
  0xb8   :  { %v83_v47 = vrot.slane %v82_v46, 2 }
  0xba   :  { %v84_v48 = vadd.f32 %v83_v47, %v82_v46 }
  0xbc   :  { %v85_v49 = vrot.slane %v84_v48, 1 }
  0xbe   :  { %v86_v50 = vadd.f32 %v85_v49, %v84_v48 }
  0xc0   :  { %v87_v51 = vmul.f32 0.5, %v86_v50 }
  0xc2   :  { %89 = vst.msk [vmem:[#allocation3] sm:$0x1] %vm88_vm4, %v87_v51 }
  0xc3   :  { %100 = dma.vmem_to_hbm [thread:$0]  %s96_s10, 16, %s98_s13, [#allocation4]  }
  0xc4   :  { %135 = dma.done.wait [#allocation4], 16  }
  0xc5   :  { %136 = vsyncadd [#allocation4], 4294967280 }
  0xc6   :  { %105 = vsyncpa [#allocation4], 1 }

</bundles_post_ra>
